<compile_context>
chip_gen: v5e
topology: v5e:2x2
jax: 0.10.0
libtpu: 0.0.40
codegen_flags: <defaults>
</compile_context>

<pallas_src>
import math
from functools import partial

import jax
import jax.numpy as jnp
import numpy as np
from jax.experimental import pallas as pl
from jax.experimental.pallas import tpu as pltpu


def _drop_path_kernel(scale_ref, x_ref, o_ref):
    # scale_ref: (B,) f32 in SMEM (scalar prefetch).
    # x_ref / o_ref: (1, TR, C) VMEM tiles of sample b.
    b = pl.program_id(0)
    s = scale_ref[b].astype(x_ref.dtype)   # 0 or 1/keep_prob, in x's dtype
    o_ref[...] = x_ref[...] * s


def _pick_lane_width(L):
    """Largest lane-dense width (multiple of 128) that divides L, else pad to 128."""
    for c in (1024, 512, 256, 128):
        if L % c == 0:
            return c
    return 128  # will require padding


# ~2 MiB per block; x4 (in+out, double-buffered) stays under v5e's 16 MiB
# scoped-VMEM default and well under v6e/v7x limits.
_TARGET_BLOCK_BYTES = 2 * 1024 * 1024


def drop_path_pallas(x, drop_prob: float = 0.0, training: bool = False, key=None):
    """Pallas DropPath. Identity when not training or drop_prob == 0."""
    if drop_prob == 0.0 or not training:
        return x
    keep_prob = 1.0 - drop_prob

    B = x.shape[0]
    orig_shape = x.shape
    if key is None:
        key = jax.random.PRNGKey(0)

    # Per-sample keep decision: floor(keep_prob + U[0,1)) is 1 w.p. keep_prob
    # else 0 (distributionally identical to torch.rand; not bit-exact).
    u = jax.random.uniform(key, (B,), dtype=jnp.float32)
    scale = jnp.floor(jnp.float32(keep_prob) + u) * jnp.float32(1.0 / keep_prob)

    # Flatten the tail dims lane-dense: (B, R, C), C a multiple of 128.
    L = int(np.prod(orig_shape[1:]))
    C = _pick_lane_width(L)
    pad = (-L) % C
    x_flat = x.reshape(B, L)
    if pad:
        x_flat = jnp.pad(x_flat, ((0, 0), (0, pad)))
    Lp = L + pad
    R = Lp // C
    x3 = x_flat.reshape(B, R, C)

    itemsize = jnp.dtype(x.dtype).itemsize
    max_rows = max(8, (_TARGET_BLOCK_BYTES // (C * itemsize)) // 8 * 8)

    if R <= max_rows:
        # Whole sample fits in one block: 1-D grid over batch.
        tr = R
        grid = (B,)
        idx_map = lambda b, scale_ref: (b, 0, 0)
        dims = ("parallel",)
    else:
        # Tile the flattened tail: 2-D grid (batch, tile). Keep decision only
        # depends on b, so all tiles of a sample agree.
        tr = max_rows  # multiple of 8
        grid = (B, pl.cdiv(R, tr))
        idx_map = lambda b, t, scale_ref: (b, t, 0)
        dims = ("parallel", "parallel")

    block = (1, tr, C)

    out3 = pl.pallas_call(
        _drop_path_kernel,
        out_shape=jax.ShapeDtypeStruct((B, R, C), x.dtype),
        grid_spec=pltpu.PrefetchScalarGridSpec(
            num_scalar_prefetch=1,
            grid=grid,
            in_specs=[pl.BlockSpec(block, idx_map)],
            out_specs=pl.BlockSpec(block, idx_map),
        ),
        compiler_params=pltpu.CompilerParams(dimension_semantics=dims),
    )(scale, x3)

    out = out3.reshape(B, Lp)
    if pad:
        out = out[:, :L]
    return out.reshape(orig_shape)


class DropPath:
    """Minimal JAX counterpart of the PyTorch DropPath module."""

    def __init__(self, drop_prob=None):
        self.drop_prob = 0.0 if drop_prob is None else float(drop_prob)
        self.training = True

    def __call__(self, x, key=None):
        # Caller should pass a fresh key per layer/step to decorrelate masks.
        return drop_path_pallas(x, self.drop_prob, self.training, key=key)


if __name__ == "__main__":
    root = jax.random.PRNGKey(0)
    kx, kdrop, kx2, kdrop2 = jax.random.split(root, 4)

    # Transformer-style activations: (batch, tokens, hidden)
    B, N, D = 2, 8, 32
    x = jax.random.normal(kx, (B, N, D), dtype=jnp.float32)

    module = DropPath(drop_prob=0.5)
    module.training = True
    out = jax.block_until_ready(module(x, key=kdrop))
    assert out.shape == x.shape and out.dtype == x.dtype

    # eval-mode path (identity)
    module.training = False
    out_eval = jax.block_until_ready(module(x))
    assert jnp.array_equal(out_eval, x)

    # sanity: each sample is either all-zero or x / keep_prob
    keep_prob = 0.5
    for b in range(B):
        slab = out[b]
        is_zero = bool(jnp.all(slab == 0.0))
        is_scaled = bool(jnp.allclose(slab, x[b] / keep_prob, atol=1e-5))
        assert is_zero or is_scaled

    # second shape / dtype: 4-D bf16 activations (broadcast over all non-batch dims)
    x2 = jax.random.normal(kx2, (2, 4, 16, 16), dtype=jnp.bfloat16)
    module.training = True
    out2 = jax.block_until_ready(module(x2, key=kdrop2))
    assert out2.shape == x2.shape and out2.dtype == x2.dtype
    for b in range(x2.shape[0]):
        slab = out2[b].astype(jnp.float32)
        ref = (x2[b].astype(jnp.float32)) / keep_prob
        is_zero = bool(jnp.all(slab == 0.0))
        is_scaled = bool(jnp.allclose(slab, ref, atol=3e-2, rtol=3e-2))
        assert is_zero or is_scaled

    print("KERNEL_OK")
</pallas_src>

<mosaic_0001>
module attributes {stable_mosaic.version = 11 : i64} {
  func.func @_drop_path_kernel(%arg0: i32, %arg1: memref<2xf32, #tpu.memory_space<smem>>, %arg2: memref<1x1x256xf32, #tpu.memory_space<vmem>>, %arg3: memref<1x1x256xf32, #tpu.memory_space<vmem>>) attributes {dimension_semantics = [#tpu.dimension_semantics<parallel>], iteration_bounds = array<i64: 2>, scalar_prefetch = 1 : i64, scratch_operands = 0 : i64, tpu.core_type = #tpu.core_type<tc>, window_params = [{transform_indices = @transform_0, window_bounds = array<i64: 1, 1, 256>}, {transform_indices = @transform_1, window_bounds = array<i64: 1, 1, 256>}]} {
    %0 = arith.index_cast %arg0 : i32 to index
    %1 = memref.load %arg1[%0] : memref<2xf32, #tpu.memory_space<smem>>
    %c0 = arith.constant 0 : index
    %c0_0 = arith.constant 0 : index
    %c0_1 = arith.constant 0 : index
    %2 = vector.load %arg2[%c0, %c0_0, %c0_1] : memref<1x1x256xf32, #tpu.memory_space<vmem>>, vector<1x1x256xf32>
    %3 = vector.broadcast %1 : f32 to vector<1x1x256xf32>
    %4 = arith.mulf %2, %3 : vector<1x1x256xf32>
    %c0_2 = arith.constant 0 : index
    %c0_3 = arith.constant 0 : index
    %c0_4 = arith.constant 0 : index
    %5 = vector.load %arg3[%c0_2, %c0_3, %c0_4] : memref<1x1x256xf32, #tpu.memory_space<vmem>>, vector<1x1x256xf32>
    tpu.vector_store %arg3[%c0_2, %c0_3, %c0_4], %4 {strides = array<i32>} : memref<1x1x256xf32, #tpu.memory_space<vmem>>, vector<1x1x256xf32>,
    return
  }
  func.func @transform_0(%arg0: i32, %arg1: memref<2xf32, #tpu.memory_space<smem>>) -> (i32, i32, i32) {
    %c0_i32 = arith.constant 0 : i32
    %c0_i32_0 = arith.constant 0 : i32
    %c0_i32_1 = arith.constant 0 : i32
    return %arg0, %c0_i32, %c0_i32_0 : i32, i32, i32
  }
  func.func @transform_1(%arg0: i32, %arg1: memref<2xf32, #tpu.memory_space<smem>>) -> (i32, i32, i32) {
    %c0_i32 = arith.constant 0 : i32
    %c0_i32_0 = arith.constant 0 : i32
    %c0_i32_1 = arith.constant 0 : i32
    return %arg0, %c0_i32, %c0_i32_0 : i32, i32, i32
  }
}

</mosaic_0001>

<bundles_post_ra>
// kernel: tpu_custom_call.1
= control target key start
LH: loop header
LB: loop body
LE: loop exit
PB: predicated region body
PF: predicated region fallthrough
CT: control target
= control target key end

     0   :  { %s409_s12 = smov [#allocation3]   ;;  %s556_s0 = inlined_call_operand.hbm [shape: f32[2], index: 0, kind: input, shape index: {}]   ;;  %s557_s1 = inlined_call_operand.hbm [shape: f32[2,1,256], index: 1, kind: input, shape index: {}]   ;;  %s558_s2 = inlined_call_operand.hbm [shape: f32[2,1,256], index: 2, kind: output, shape index: {}]  }
   0x1   :  { %s8_s11 = sshll.u32 %s556_s0, 4  ;;  %s9_s11 = int_to_ptr.hbm [resolvable:$true] %s8_s11 }
   0x2   :  { %11 = dma.hbm_to_smem %s9_s11, 16, %s409_s12, [#allocation2] }
   0x3   :  { %383 = dma.done.wait [#allocation2], 16 }
   0x4   :  { %384 = vsyncadd [#allocation2], 4294967280 }
   0x5   :  { %14 = sfence }
   0x6   :  { %15 = vsyncpa [#allocation5], 0 }
   0x7   :  { %17 = vsyncpa [#allocation5 + $0x1], 0 }
   0x8   :  { %18 = vsyncpa [#allocation6], 0 }
   0x9   :  { %20 = vsyncpa [#allocation6 + $0x1], 0  ;;  %s428_s13 = smov 0   ;;  %s430_s14 = smov 0  }
   0xa   :  { %s432_s15 = smov 0   ;;  %s434_s16 = smov 0  }
   0xb LB: > { %s449_s0 = sadd.s32 4294967295, %s407_s16   ;;  %s238_s17 = sadd.s32 4294967294, %s407_s16   ;;  %s407_s16 = sphi %s434_s16, %s568_s16   ;;  %s403_s15 = sphi %s432_s15, %s567_s15   ;;  %s399_s14 = sphi %s430_s14, %s566_s14   ;;  %s395_s13 = sphi %s428_s13, %s565_s13  }
   0xc   : > { %s453_s18 = sadd.s32 1, %s407_s16   ;;  %s33_s19 = sadd.s32 1, %s403_s15 }
   0xd   : > { %s30_s20 = ssub.s32 %s407_s16, %s453_s18  ;;  %p40_p0 = scmp.ne.s32.totalorder %s403_s15, %s399_s14 }
   0xe   : > { %p31_p1 = scmp.eq.s32.totalorder %s30_s20, 0  ;;  %p41_p2 = scmp.eq.s32.totalorder %s407_s16, 0 }
   0xf   : > { %p46_p3 = scmp.ne.s32.totalorder %s399_s14, %s395_s13  ;;  %p47_p4 = scmp.eq.s32.totalorder %s449_s0, 0 }
  0x10   : > { %s465_s21 = scalar_select %p31_p1, %s403_s15, %s33_s19  }
  0x11   : > { %p467_p5 = por %p41_p2, %p40_p0  ;;  %p471_p6 = por %p47_p4, %p46_p3 }
  0x12   : > { %p70_p7 = scmp.eq.s32.totalorder %s449_s0, 1  ;;  %p76_p8 = scmp.eq.s32.totalorder %s238_s17, 1 }
  0x13   : > { %p262_p10 = scmp.lt.s32.totalorder %s407_s16, 2  ;;  %s96_s26 = sand.u32 1, %s403_s15  }
  0x14   : > { %p478_p11 = por %p70_p7, %p40_p0  ;;  %p482_p12 = por %p76_p8, %p46_p3 }
  0x15   : > { %s242_s27 = sshll.u32 %s407_s16, 1  ;;  %s241_s28 = sshll.u32 %s96_s26, 1 }
  0x16   : > { %s104_s3 = scalar_lea.hbm %s557_s1, %s242_s27  ;;  %s100_s5 = scalar_lea.vmem [#allocation4], %s241_s28 }
  0x17   : > { %s106_s4 = sshll.u32 %s104_s3, 4  ;;  %s108_s6 = sshll.u32 %s100_s5, 4  ;;  %s107_s4 = int_to_ptr.hbm [resolvable:$true] %s106_s4  ;;  %s109_s6 = int_to_ptr.vmem [resolvable:$true] %s108_s6 }
  0x18   : > { %p493_p13 = pnand %p262_p10, %p467_p5  ;;  %p243_p0 = scmp.ge.s32.totalorder %s407_s16, 1 }
  0x19   : > { %p113_p1 = scmp.lt.s32.totalorder %s407_s16, 3  ;;  %s97_s8 = scalar_lea.sflag [#allocation5], %s96_s26 }
  0x1a   : > { %s309_s9 = sshra.s32 %s107_s4, 4  ;;  %p313_p3 = pneg %p493_p13  ;;  %s310_s9 = int_to_ptr.hbm [resolvable:$true] %s309_s9 }
  0x1b   : > { %s311_s10 = scalar_lea.hbm %s310_s9, 2  ;;  %s316_s17 = scalar_lea.hbm %s557_s1, 4 }
  0x1c   : > { %p312_p2 = scmp.ne.s32.totalorder %s310_s9, %s311_s10  ;;  %p317_p5 = scmp.lt.s32.totalorder %s310_s9, %s557_s1 }
  0x1d   : > { %p318_p8 = scmp.lt.s32.totalorder %s316_s17, %s311_s10 }
  0x1e   : > { %p314_p4 = pnand %p313_p3, %p312_p2 }
  0x1f   : > { %p319_p10 = por %p318_p8, %p317_p5 }
  0x20   : > { %p315_p7 = pneg %p314_p4 }
  0x22   : > { %p320_p9 = pnand %p319_p10, %p315_p7 }
  0x24   : > { %323 = shalt.err (!%p320_p9)
}
  0x25   : > { %257 = dma.hbm_to_vmem [thread:$0]  (!%p493_p13), %s107_s4, 32, %s109_s6, %s97_s8  }
  0x26   : > { %p114_p2 = pnand %p243_p0, %p113_p1 }
  0x27   : > { %s514_s22 = sand.u32 (!%p114_p2), 1, %s399_s14  }
  0x28   : > { %117 = sbr.rel (%p114_p2) target bundleno = 61 (0x3d), region = 24  ;;  %s244_s26 = sshll.u32 (!%p114_p2), %s514_s22, 1 }
  0x29   : > { %s120_s27 = scalar_lea.sflag (!%p114_p2), [#allocation5], %s514_s22  ;;  %s123_s28 = scalar_lea.vmem (!%p114_p2), [#allocation4], %s244_s26 }
  0x2d   : > { %386 = dma.done.wait (%p471_p6), %s120_s27, 32  }
  0x2e   : > { %388 = vsyncadd (%p471_p6), %s120_s27, 4294967264  ;;  %s143_s29 = sld [smem:[#allocation3 + %s449_s0]]  ;;  %s247_s30 = sshll.u32 %s449_s0, 1  ;;  %v147_v0 = vlaneseq  ;;  %v144_v1 = vld [vmem:[%s123_s28] sm:$0x3] }
  0x2f   : > { %s163_s5 = scalar_lea.hbm %s558_s2, %s247_s30  ;;  %s142_s6 = scalar_lea.vmem [#allocation7], %s244_s26 }
  0x30   : > { %s165_s7 = sshll.u32 %s142_s6, 4  ;;  %s167_s8 = sshll.u32 %s163_s5, 4  ;;  %vm149_vm0 = vcmp.lt.s32.totalorder %v147_v0, 256  ;;  %s166_s7 = int_to_ptr.vmem [resolvable:$true] %s165_s7  ;;  %s168_s8 = int_to_ptr.hbm [resolvable:$true] %s167_s8 }
  0x31   : > { %s153_s23 = scalar_lea.sflag [#allocation6], %s514_s22  ;;  %s353_s9 = sshra.s32 %s168_s8, 4  ;;  %s354_s9 = int_to_ptr.hbm [resolvable:$true] %s353_s9 }
  0x32   : > { %s355_s0 = scalar_lea.hbm %s354_s9, 2  ;;  %s359_s12 = scalar_lea.hbm %s558_s2, 4 }
  0x33   : > { %p356_p6 = scmp.ne.s32.totalorder %s354_s9, %s355_s0  ;;  %p360_p0 = scmp.lt.s32.totalorder %s354_s9, %s558_s2 }
  0x34   : > { %v145_v2 = vstv %s143_s29  ;;  %p361_p1 = scmp.lt.s32.totalorder %s359_s12, %s355_s0 }
  0x35   : > { %v146_v3 = vmul.f32 %v145_v2, %v144_v1  ;;  %p357_p9 = pnand %p356_p6, %p478_p11 }
  0x36   : > { %p362_p3 = por %p361_p1, %p360_p0 }
  0x37   : > { %151 = vst.msk [vmem:[%s142_s6] sm:$0x3] %vm149_vm0, %v146_v3  ;;  %p358_p13 = pneg %p357_p9 }
  0x39   : > { %p363_p4 = pnand %p362_p3, %p358_p13 }
  0x3b   : > { %366 = shalt.err (!%p363_p4)
}
  0x3c   : > { %252 = dma.vmem_to_hbm [thread:$0]  (%p478_p11), %s166_s7, 32, %s168_s8, %s153_s23  }
  0x3d PF: > { %s179_s20 = sand.u32 1, %s395_s13   ;;  %p564_p7 = scmp.ge.s32.totalorder %s407_s16, 2 }
  0x3e   : > { %s180_s22 = scalar_lea.sflag [#allocation6], %s179_s20 }
  0x3f   : > { %p259_p5 = pnand %p564_p7, %p482_p12 }
  0x41   : > { %p260_p8 = pneg %p259_p5 }
  0x43   : > { %390 = dma.done.wait (%p260_p8), %s180_s22, 32  }
  0x44   : > { %392 = vsyncadd (%p260_p8), %s180_s22, 4294967264  ;;  %p23_p10 = scmp.ge.s32.totalorder %s453_s18, 4   ;;  %s565_s13 = smov %s399_s14 }
  0x45   : > { %s566_s14 = smov %s403_s15  ;;  %s567_s15 = smov %s465_s21 }
  0x46   : > { %s568_s16 = smov %s453_s18  ;;  %25 = sbr.rel (!%p23_p10) target bundleno = 11 (0xb), region = 69 }
  0x4b   :  { %186 = vsyncpa [#allocation5], 1 }
  0x4c   :  { %188 = vsyncpa [#allocation5 + $0x1], 1 }
  0x4d   :  { %189 = vsyncpa [#allocation6], 1 }
  0x4e   :  { %191 = vsyncpa [#allocation6 + $0x1], 1 }

</bundles_post_ra>
